<compile_context>
chip_gen: v5e
topology: v5e:2x2
jax: 0.10.0
libtpu: 0.0.40
codegen_flags: <defaults>
</compile_context>

<pallas_src>
import jax
import jax.numpy as jnp
from jax.experimental import pallas as pl
from jax.experimental.pallas import tpu as pltpu


def _round_up(v, m):
    return -(-v // m) * m


def _vmem_capacity_bytes():
    """Physical VMEM of the current TPU generation; conservative fallback."""
    try:
        return int(pltpu.get_tpu_info().vmem_capacity_bytes)
    except Exception:
        return 64 << 20  # v7x per-TC size: safe lower bound everywhere


def local_op_kernel(x_ref, w1_ref, b1_ref, w2_ref, b2_ref, o_ref):
    # x_ref : (1, TBn*s, d)      input slab (original dtype, already row-collapsed)
    # w1_ref: (d, out_p)         BN1-folded conv1 weight (compute dtype, resident)
    # b1_ref: (1, out_p) f32     BN1 shift
    # w2_ref: (out_p, out_p)     BN2-folded conv2 weight (compute dtype, resident)
    # b2_ref: (1, out_p) f32     BN2 shift
    # o_ref : (1, out_p, TBn)    pooled + transposed output slab
    rows = x_ref.shape[1]
    out_p, tbn = o_ref.shape[1], o_ref.shape[2]
    s = rows // tbn

    x = x_ref[0, :, :].astype(w1_ref.dtype)                            # cheap VPU cast
    h = jnp.dot(x, w1_ref[...], preferred_element_type=jnp.float32)    # (rows, out_p) f32
    h = jnp.maximum(h + b1_ref[...], 0.0).astype(w2_ref.dtype)         # fused bias+ReLU+downcast
    h = jnp.dot(h, w2_ref[...], preferred_element_type=jnp.float32)    # (rows, out_p) f32
    h = jnp.maximum(h + b2_ref[...], 0.0)                              # fused bias+ReLU (f32)
    pooled = jnp.max(h.reshape(tbn, s, out_p), axis=1)                 # max-pool over s
    o_ref[0, :, :] = pooled.T.astype(o_ref.dtype)                      # XLU transpose, lane-dense store


def fold_local_op_params(w1, w2, bn1, bn2, eps=1e-5, compute_dtype=jnp.bfloat16):
    """Fold eval-mode BN into the 1x1-conv weights (scale) + f32 shifts; zero-pad
    the channel axis to a multiple of 128 for lane-dense matmuls/stores.
    Call ONCE per parameter set (pure per-call overhead otherwise)."""
    out, d = w1.shape
    out_p = _round_up(out, 128)

    def fold(bn):
        gamma, beta, mean, var = bn
        scale = gamma / jnp.sqrt(var + eps)
        shift = beta - mean * scale
        return scale, shift

    sc1, sh1 = fold(bn1)
    sc2, sh2 = fold(bn2)
    w1f = (w1 * sc1[:, None]).T        # (d, out):   w1f[c,o] = sc1[o] * w1[o,c]
    w2f = (w2 * sc2[:, None]).T        # (out, out)

    # Padded channels: zero weight + zero shift -> relu(0) = 0, and the zero rows of
    # w2p block their contribution to real channels; sliced off in the wrapper.
    w1p = jnp.zeros((d, out_p), compute_dtype).at[:, :out].set(w1f.astype(compute_dtype))
    w2p = jnp.zeros((out_p, out_p), compute_dtype).at[:out, :out].set(w2f.astype(compute_dtype))
    sh1p = jnp.zeros((1, out_p), jnp.float32).at[0, :out].set(sh1.astype(jnp.float32))
    sh2p = jnp.zeros((1, out_p), jnp.float32).at[0, :out].set(sh2.astype(jnp.float32))
    return {"w1p": w1p, "sh1p": sh1p, "w2p": w2p, "sh2p": sh2p, "out": int(out)}


def local_op(x, params, out_dtype=jnp.float32):
    b, n, s, d = x.shape
    w1p, sh1p = params["w1p"], params["sh1p"]
    w2p, sh2p = params["w2p"], params["sh2p"]
    out = params["out"]
    out_p = w1p.shape[1]
    assert w1p.shape[0] == d, "in_channels mismatch between x and folded weights"

    # ---------------- per-generation, VMEM-aware slab sizing ----------------
    vmem_cap = _vmem_capacity_bytes()
    vmem_limit = int(min(vmem_cap * 3 // 4, 96 << 20))   # ~96 MiB v5e/v6e, 48 MiB v7x
    tile_budget = vmem_limit // 2                         # headroom for Mosaic scratch/spills

    x_item = jnp.dtype(x.dtype).itemsize
    w_item = jnp.dtype(w1p.dtype).itemsize
    d_lanes = _round_up(d, 128)                           # VMEM footprint of x's lane dim

    # Resident (constant index-map) buffers, conservatively counted double-buffered.
    resident = 2 * (d_lanes * out_p + out_p * out_p) * w_item + 4 * out_p * 4

    def step_bytes(tbn_):
        rows = tbn_ * s
        x_tile = 2 * rows * d_lanes * x_item              # double-buffered input slab
        inter = rows * out_p * (8 + w_item)               # f32 accs + narrow ReLU copy
        o_tile = 2 * out_p * _round_up(tbn_, 128) * 4     # double-buffered f32 output slab
        return x_tile + inter + o_tile

    # TBn granularity: 128 (lane-dense transposed stores) when n is large enough,
    # otherwise a single full-n block rounded to the 8-sublane granule.
    granule = 128 if n >= 128 else _round_up(n, 8)
    n_cap = _round_up(n, granule)

    tbn = granule
    while tbn + granule <= n_cap and resident + step_bytes(tbn + granule) <= tile_budget:
        tbn += granule

    # Ensure the grid has >= 2 steps (input/output pipelining + v7x megacore).
    def total_steps(tbn_):
        return b * (_round_up(n, tbn_) // tbn_)

    while tbn > granule and total_steps(tbn) < 2:
        tbn = max(granule, ((tbn // 2) // granule) * granule)

    n_pad = _round_up(n, tbn)
    if n_pad != n:
        x = jnp.pad(x, ((0, 0), (0, n_pad - n), (0, 0), (0, 0)))
    # (b, n_pad, s, d) -> (b, n_pad*s, d): free contiguous merge; the torch permute is
    # absorbed into the transposed (d, out_p) weights, so the math is unchanged.
    x2 = x.reshape(b, n_pad * s, d)

    grid = (b, n_pad // tbn)

    y = pl.pallas_call(
        local_op_kernel,
        out_shape=jax.ShapeDtypeStruct((b, out_p, n_pad), out_dtype),
        grid_spec=pltpu.PrefetchScalarGridSpec(
            num_scalar_prefetch=0,
            grid=grid,
            in_specs=[
                pl.BlockSpec((1, tbn * s, d), lambda bi, ni: (bi, ni, 0)),   # x slab
                pl.BlockSpec((d, out_p), lambda bi, ni: (0, 0)),             # folded w1 (resident)
                pl.BlockSpec((1, out_p), lambda bi, ni: (0, 0)),             # bn1 shift
                pl.BlockSpec((out_p, out_p), lambda bi, ni: (0, 0)),         # folded w2 (resident)
                pl.BlockSpec((1, out_p), lambda bi, ni: (0, 0)),             # bn2 shift
            ],
            out_specs=pl.BlockSpec((1, out_p, tbn), lambda bi, ni: (bi, 0, ni)),
        ),
        compiler_params=pltpu.CompilerParams(
            dimension_semantics=("parallel", "parallel"),   # independent slabs
            vmem_limit_bytes=vmem_limit,
        ),
    )(x2, w1p, sh1p, w2p, sh2p)

    # Drop padded channels / padded n rows; output is already (b, out, n) — no transpose.
    return y[:, :out, :n]


def local_op_ref(x, w1, w2, bn1, bn2, eps=1e-5):
    """Pure-JAX reference of the PyTorch forward (eval-mode BN)."""
    b, n, s, d = x.shape
    out = w1.shape[0]
    xb = jnp.transpose(x, (0, 1, 3, 2)).reshape(b * n, d, s)

    def block(h, w, bn):
        gamma, beta, mean, var = bn
        y = jnp.einsum("oc,bcs->bos", w, h)
        y = (y - mean[None, :, None]) / jnp.sqrt(var[None, :, None] + eps)
        y = y * gamma[None, :, None] + beta[None, :, None]
        return jnp.maximum(y, 0.0)

    h = block(xb, w1, bn1)
    h = block(h, w2, bn2)
    pooled = jnp.max(h, axis=-1)                      # (b*n, out)
    return jnp.transpose(pooled.reshape(b, n, out), (0, 2, 1))


if __name__ == "__main__":
    # Small shapes implied by the forward: (b, n, s, d), d = in_channels.
    b, n, s, d = 2, 4, 8, 16
    out_channels = 32

    key = jax.random.PRNGKey(0)
    kx, kw1, kw2, kg1, kb1, km1, kv1, kg2, kb2, km2, kv2 = jax.random.split(key, 11)

    x = jax.random.normal(kx, (b, n, s, d), dtype=jnp.float32)

    # Conv1d kernel_size=1, bias=False -> weight (out, in); eval-mode BN stats.
    w1 = jax.random.normal(kw1, (out_channels, d), dtype=jnp.float32) * 0.1
    w2 = jax.random.normal(kw2, (out_channels, out_channels), dtype=jnp.float32) * 0.1
    bn1 = (
        1.0 + 0.1 * jax.random.normal(kg1, (out_channels,), dtype=jnp.float32),  # gamma
        0.1 * jax.random.normal(kb1, (out_channels,), dtype=jnp.float32),        # beta
        0.1 * jax.random.normal(km1, (out_channels,), dtype=jnp.float32),        # running_mean
        1.0 + 0.1 * jax.nn.softplus(jax.random.normal(kv1, (out_channels,))),    # running_var
    )
    bn2 = (
        1.0 + 0.1 * jax.random.normal(kg2, (out_channels,), dtype=jnp.float32),
        0.1 * jax.random.normal(kb2, (out_channels,), dtype=jnp.float32),
        0.1 * jax.random.normal(km2, (out_channels,), dtype=jnp.float32),
        1.0 + 0.1 * jax.nn.softplus(jax.random.normal(kv2, (out_channels,))),
    )

    y_ref = local_op_ref(x, w1, w2, bn1, bn2)

    # f32 MXU path (tight tolerance). Params folded once.
    p_f32 = fold_local_op_params(w1, w2, bn1, bn2, compute_dtype=jnp.float32)
    run_f32 = jax.jit(lambda xx: local_op(xx, p_f32))
    y32 = jax.block_until_ready(run_f32(x))
    assert y32.shape == (b, out_channels, n), y32.shape
    assert jnp.allclose(y32, y_ref, rtol=1e-3, atol=1e-3), "f32 mismatch vs reference"

    # Default bf16 path: bf16 folded weights + bf16 x stream (halved HBM reads),
    # f32 MXU accumulation and f32 bias/ReLU inside the kernel.
    p_bf16 = fold_local_op_params(w1, w2, bn1, bn2)   # compute_dtype defaults to bf16
    run_bf16 = jax.jit(lambda xx: local_op(xx, p_bf16))
    y_bf = jax.block_until_ready(run_bf16(x.astype(jnp.bfloat16)))
    assert y_bf.shape == (b, out_channels, n), y_bf.shape
    assert jnp.allclose(y_bf, y_ref, rtol=3e-2, atol=3e-2), "bf16 mismatch vs reference"

    print("KERNEL_OK")
</pallas_src>

<mosaic_0001>
module attributes {stable_mosaic.version = 11 : i64} {
  func.func @local_op_kernel(%arg0: i32, %arg1: i32, %arg2: memref<1x64x16xf32, #tpu.memory_space<vmem>>, %arg3: memref<16x128xf32, #tpu.memory_space<vmem>>, %arg4: memref<1x128xf32, #tpu.memory_space<vmem>>, %arg5: memref<128x128xf32, #tpu.memory_space<vmem>>, %arg6: memref<1x128xf32, #tpu.memory_space<vmem>>, %arg7: memref<1x128x8xf32, #tpu.memory_space<vmem>>) attributes {dimension_semantics = [#tpu.dimension_semantics<parallel>, #tpu.dimension_semantics<parallel>], iteration_bounds = array<i64: 2, 1>, scalar_prefetch = 0 : i64, scratch_operands = 0 : i64, tpu.core_type = #tpu.core_type<tc>, window_params = [{transform_indices = @transform_0, window_bounds = array<i64: 1, 64, 16>}, {pipeline_mode = #tpu.pipeline_mode<synchronous>, transform_indices = @transform_1, window_bounds = array<i64: 16, 128>}, {pipeline_mode = #tpu.pipeline_mode<synchronous>, transform_indices = @transform_2, window_bounds = array<i64: 1, 128>}, {pipeline_mode = #tpu.pipeline_mode<synchronous>, transform_indices = @transform_3, window_bounds = array<i64: 128, 128>}, {pipeline_mode = #tpu.pipeline_mode<synchronous>, transform_indices = @transform_4, window_bounds = array<i64: 1, 128>}, {transform_indices = @transform_5, window_bounds = array<i64: 1, 128, 8>}]} {
    %c0 = arith.constant 0 : index
    %c0_0 = arith.constant 0 : index
    %c0_1 = arith.constant 0 : index
    %0 = vector.load %arg2[%c0, %c0_0, %c0_1] : memref<1x64x16xf32, #tpu.memory_space<vmem>>, vector<1x64x16xf32>
    %1 = vector.shape_cast %0 : vector<1x64x16xf32> to vector<64x16xf32>
    %c0_2 = arith.constant 0 : index
    %c0_3 = arith.constant 0 : index
    %2 = vector.load %arg3[%c0_2, %c0_3] : memref<16x128xf32, #tpu.memory_space<vmem>>, vector<16x128xf32>
    %cst = arith.constant dense<0.000000e+00> : vector<64x128xf32>
    %3 = tpu.matmul %1, %2, %cst {dimension_numbers = #tpu.dot_dimension_numbers<[1], [0], [0], [1], [0, 0, 1, 1], [], []>} : vector<64x16xf32>, vector<16x128xf32>, vector<64x128xf32> -> vector<64x128xf32>
    %c0_4 = arith.constant 0 : index
    %c0_5 = arith.constant 0 : index
    %4 = vector.load %arg4[%c0_4, %c0_5] : memref<1x128xf32, #tpu.memory_space<vmem>>, vector<1x128xf32>
    %5 = vector.broadcast %4 : vector<1x128xf32> to vector<64x128xf32>
    %6 = arith.addf %3, %5 : vector<64x128xf32>
    %cst_6 = arith.constant 0.000000e+00 : f32
    %7 = vector.broadcast %cst_6 : f32 to vector<64x128xf32>
    %8 = arith.maximumf %6, %7 : vector<64x128xf32>
    %c0_7 = arith.constant 0 : index
    %c0_8 = arith.constant 0 : index
    %9 = vector.load %arg5[%c0_7, %c0_8] : memref<128x128xf32, #tpu.memory_space<vmem>>, vector<128x128xf32>
    %cst_9 = arith.constant dense<0.000000e+00> : vector<64x128xf32>
    %10 = tpu.matmul %8, %9, %cst_9 {dimension_numbers = #tpu.dot_dimension_numbers<[1], [0], [0], [1], [0, 0, 1, 1], [], []>} : vector<64x128xf32>, vector<128x128xf32>, vector<64x128xf32> -> vector<64x128xf32>
    %c0_10 = arith.constant 0 : index
    %c0_11 = arith.constant 0 : index
    %11 = vector.load %arg6[%c0_10, %c0_11] : memref<1x128xf32, #tpu.memory_space<vmem>>, vector<1x128xf32>
    %12 = vector.broadcast %11 : vector<1x128xf32> to vector<64x128xf32>
    %13 = arith.addf %10, %12 : vector<64x128xf32>
    %cst_12 = arith.constant 0.000000e+00 : f32
    %14 = vector.broadcast %cst_12 : f32 to vector<64x128xf32>
    %15 = arith.maximumf %13, %14 : vector<64x128xf32>
    %16 = vector.shape_cast %15 : vector<64x128xf32> to vector<8x8x128xf32>
    %cst_13 = arith.constant dense<0xFF800000> : vector<8x128xf32>
    %17 = vector.multi_reduction <maximumf>, %16, %cst_13 [1] : vector<8x8x128xf32> to vector<8x128xf32>
    %18 = tpu.transpose %17, [1, 0] : vector<8x128xf32> -> vector<128x8xf32>
    %c0_14 = arith.constant 0 : index
    %c0_15 = arith.constant 0 : index
    %c0_16 = arith.constant 0 : index
    %19 = vector.load %arg7[%c0_14, %c0_15, %c0_16] : memref<1x128x8xf32, #tpu.memory_space<vmem>>, vector<1x128x8xf32>
    %20 = vector.shape_cast %19 : vector<1x128x8xf32> to vector<128x8xf32>
    %21 = vector.shape_cast %18 : vector<128x8xf32> to vector<1x128x8xf32>
    tpu.vector_store %arg7[%c0_14, %c0_15, %c0_16], %21 {strides = array<i32>} : memref<1x128x8xf32, #tpu.memory_space<vmem>>, vector<1x128x8xf32>,
    return
  }
  func.func @transform_0(%arg0: i32, %arg1: i32) -> (i32, i32, i32) {
    %c0_i32 = arith.constant 0 : i32
    %c0_i32_0 = arith.constant 0 : i32
    return %arg0, %arg1, %c0_i32 : i32, i32, i32
  }
  func.func @transform_1(%arg0: i32, %arg1: i32) -> (i32, i32) {
    %c0_i32 = arith.constant 0 : i32
    %c0_i32_0 = arith.constant 0 : i32
    %c0_i32_1 = arith.constant 0 : i32
    return %c0_i32, %c0_i32_0 : i32, i32
  }
  func.func @transform_2(%arg0: i32, %arg1: i32) -> (i32, i32) {
    %c0_i32 = arith.constant 0 : i32
    %c0_i32_0 = arith.constant 0 : i32
    %c0_i32_1 = arith.constant 0 : i32
    return %c0_i32, %c0_i32_0 : i32, i32
  }
  func.func @transform_3(%arg0: i32, %arg1: i32) -> (i32, i32) {
    %c0_i32 = arith.constant 0 : i32
    %c0_i32_0 = arith.constant 0 : i32
    %c0_i32_1 = arith.constant 0 : i32
    return %c0_i32, %c0_i32_0 : i32, i32
  }
  func.func @transform_4(%arg0: i32, %arg1: i32) -> (i32, i32) {
    %c0_i32 = arith.constant 0 : i32
    %c0_i32_0 = arith.constant 0 : i32
    %c0_i32_1 = arith.constant 0 : i32
    return %c0_i32, %c0_i32_0 : i32, i32
  }
  func.func @transform_5(%arg0: i32, %arg1: i32) -> (i32, i32, i32) {
    %c0_i32 = arith.constant 0 : i32
    %c0_i32_0 = arith.constant 0 : i32
    return %arg0, %c0_i32, %arg1 : i32, i32, i32
  }
}

</mosaic_0001>

<bundles_post_ra>
// kernel: _lambda_.1
= control target key start
LH: loop header
LB: loop body
LE: loop exit
PB: predicated region body
PF: predicated region fallthrough
CT: control target
= control target key end

     0   :  { %s755_s18 = smov 0   ;;  %s757_s19 = smov 0   ;;  %s904_s0 = inlined_call_operand.vmem [shape: f32[2,64,16], index: 0, kind: input, shape index: {}]   ;;  %s905_s1 = inlined_call_operand.vmem [shape: f32[16,128], index: 1, kind: input, shape index: {}]   ;;  %s906_s2 = inlined_call_operand.vmem [shape: f32[1,128], index: 2, kind: input, shape index: {}]   ;;  %s907_s3 = inlined_call_operand.vmem [shape: f32[128,128], index: 3, kind: input, shape index: {}]   ;;  %s908_s4 = inlined_call_operand.vmem [shape: f32[1,128], index: 4, kind: input, shape index: {}]   ;;  %s909_s5 = inlined_call_operand.vmem [shape: f32[2,128,8], index: 5, kind: output, shape index: {}]  }
   0x1   :  { %s759_s20 = smov 0  }
   0x2 LB: > { %s27_s21 = sadd.s32 1, %s719_s19  ;;  %p625_p0 = scmp.ge.s32.totalorder %s723_s20, 1  ;;  %s723_s20 = sphi %s759_s20, %s15_s20   ;;  %s719_s19 = sphi %s757_s19, %s911_s19   ;;  %s715_s18 = sphi %s755_s18, %s910_s18  }
   0x3   : > { %p29_p1 = scmp.ge.s32.totalorder %s27_s21, 2  ;;  %p208_p2 = scmp.lt.s32.totalorder %s723_s20, 3 }
   0x5   : > { %s913_s21 = smov (%p29_p1, %s27_s21), 0  ;;  %p209_p3 = pnand %p625_p0, %p208_p2 }
   0x6   : > { %p244_p4 = scmp.lt.s32.totalorder (!%p209_p3), %s715_s18, 1 }
   0x7   : > { %212 = sbr.rel (%p209_p3) target bundleno = 637 (0x27d), region = 40 }
   0xc   : > { %v270_v0 = vld [vmem:[%s905_s1 + $0x8] sm:$0xff]  ;;  %v269_v1 = vld [vmem:[%s905_s1] sm:$0xff]  ;;  %s915_s18 = smov (!%p244_p4, %s715_s18), 1  ;;  %vm275_vm0 = vcmask 130048   ;;  %v364_v6 = vld [vmem:[%s907_s3 + $0x78] sm:$0xff]  ;;  %vm474_vm1 = vcmask 1041409  }
   0xd   : > { %314 = vmatpush.msra.mxu0 %v270_v0  ;;  %s640_s26 = sshll.u32 %s915_s18, 6  ;;  %v363_v7 = vld [vmem:[%s907_s3 + $0x70] sm:$0xff]  ;;  %369 = vmatpush.msra.mxu1 %v364_v6  ;;  %v362_v8 = vld [vmem:[%s907_s3 + $0x68] sm:$0xff]  ;;  %v361_v9 = vld [vmem:[%s907_s3 + $0x60] sm:$0xff]  ;;  %vm476_vm2 = vcmask 1042434   ;;  %vm478_vm3 = vcmask 1043459  }
   0xe   : > { %s785_s29 = scalar_lea.vmem %s904_s0, %s640_s26  ;;  %642 = vmatpush.msra.mxu2 %v364_v6  ;;  %643 = vmatpush.msra.mxu3 %v364_v6  ;;  %v360_v11 = vld [vmem:[%s907_s3 + $0x58] sm:$0xff]  ;;  %v359_v12 = vld [vmem:[%s907_s3 + $0x50] sm:$0xff]  ;;  %v358_v13 = vld [vmem:[%s907_s3 + $0x48] sm:$0xff]  ;;  %vm480_vm4 = vcmask 1044484   ;;  %vm482_vm5 = vcmask 1045509   ;;  %vm484_vm6 = vcmask 1046534  }
   0xf   : > { %315 = vmatpush.msra.mxu0 %v269_v1  ;;  %v261_v2 = vld [vmem:[%s785_s29] sm:$0xff]  ;;  %v262_v3 = vld [vmem:[%s785_s29 + $0x8] sm:$0xff]  ;;  %v263_v4 = vld [vmem:[%s785_s29 + $0x10] sm:$0xff]  ;;  %370 = vmatpush.msra.mxu1 %v363_v7  ;;  %vm486_vm7 = vcmask 1047559   ;;  %s641_s24 = sshll.u32 %s915_s18, 7  ;;  %vm521_vm8 = vcmask 64512  }
  0x10   : > { %630 = vmatmul.msk.f32.vlgmr.msra.gmra.mxu0 %vm275_vm0, %v261_v2  ;;  %v264_v5 = vld [vmem:[%s785_s29 + $0x18] sm:$0xff]  ;;  %644 = vmatpush.msra.mxu2 %v363_v7  ;;  %v265_v10 = vld [vmem:[%s785_s29 + $0x20] sm:$0xff]  ;;  %v266_v15 = vld [vmem:[%s785_s29 + $0x28] sm:$0xff]  ;;  %s861_s27 = scalar_lea.vmem %s909_s5, %s641_s24 }
  0x11   : > { %645 = vmatpush.msra.mxu3 %v363_v7  ;;  %371 = vmatpush.msra.mxu1 %v362_v8  ;;  %v357_v14 = vld [vmem:[%s907_s3 + $0x40] sm:$0xff]  ;;  %v356_v16 = vld [vmem:[%s907_s3 + $0x38] sm:$0xff]  ;;  %v355_v17 = vld [vmem:[%s907_s3 + $0x30] sm:$0xff] }
  0x12   : > { %646 = vmatpush.msra.mxu2 %v362_v8  ;;  %v354_v18 = vld [vmem:[%s907_s3 + $0x28] sm:$0xff]  ;;  %v353_v19 = vld [vmem:[%s907_s3 + $0x20] sm:$0xff]  ;;  %v267_v20 = vld [vmem:[%s785_s29 + $0x30] sm:$0xff] }
  0x13   : > { %647 = vmatpush.msra.mxu3 %v362_v8  ;;  %372 = vmatpush.msra.mxu1 %v361_v9  ;;  %v352_v21 = vld [vmem:[%s907_s3 + $0x18] sm:$0xff]  ;;  %v351_v23 = vld [vmem:[%s907_s3 + $0x10] sm:$0xff]  ;;  %v350_v24 = vld [vmem:[%s907_s3 + $0x8] sm:$0xff] }
  0x14   : > { %648 = vmatpush.msra.mxu2 %v361_v9  ;;  %v268_v22 = vld [vmem:[%s785_s29 + $0x38] sm:$0xff]  ;;  %v349_v25 = vld [vmem:[%s907_s3] sm:$0xff] }
  0x15   : > { %649 = vmatpush.msra.mxu3 %v361_v9  ;;  %373 = vmatpush.msra.mxu1 %v360_v11  ;;  %v699_v26 = vld [vmem:[%s906_s2] ss:$0 sm:$0xff] }
  0x16   : > { %650 = vmatpush.msra.mxu2 %v360_v11  ;;  %v700_v54 = vld [vmem:[%s908_s4] ss:$0 sm:$0xff] }
  0x17   : > { %651 = vmatpush.msra.mxu3 %v360_v11  ;;  %374 = vmatpush.msra.mxu1 %v359_v12 }
  0x18   : > { %631 = vmatmul.msk.f32.gmra.mxu0 %vm275_vm0, %v262_v3  ;;  %652 = vmatpush.msra.mxu2 %v359_v12 }
  0x19   : > { %653 = vmatpush.msra.mxu3 %v359_v12  ;;  %375 = vmatpush.msra.mxu1 %v358_v13 }
  0x1a   : > { %654 = vmatpush.msra.mxu2 %v358_v13 }
  0x1b   : > { %655 = vmatpush.msra.mxu3 %v358_v13  ;;  %376 = vmatpush.msra.mxu1 %v357_v14 }
  0x1c   : > { %656 = vmatpush.msra.mxu2 %v357_v14 }
  0x1d   : > { %657 = vmatpush.msra.mxu3 %v357_v14  ;;  %377 = vmatpush.msra.mxu1 %v356_v16 }
  0x1e   : > { %658 = vmatpush.msra.mxu2 %v356_v16 }
  0x1f   : > { %659 = vmatpush.msra.mxu3 %v356_v16  ;;  %378 = vmatpush.msra.mxu1 %v355_v17 }
  0x20   : > { %632 = vmatmul.msk.f32.gmra.mxu0 %vm275_vm0, %v263_v4  ;;  %660 = vmatpush.msra.mxu2 %v355_v17 }
  0x21   : > { %661 = vmatpush.msra.mxu3 %v355_v17  ;;  %379 = vmatpush.msra.mxu1 %v354_v18 }
  0x22   : > { %662 = vmatpush.msra.mxu2 %v354_v18 }
  0x23   : > { %663 = vmatpush.msra.mxu3 %v354_v18  ;;  %380 = vmatpush.msra.mxu1 %v353_v19 }
  0x24   : > { %664 = vmatpush.msra.mxu2 %v353_v19 }
  0x25   : > { %665 = vmatpush.msra.mxu3 %v353_v19  ;;  %381 = vmatpush.msra.mxu1 %v352_v21 }
  0x26   : > { %666 = vmatpush.msra.mxu2 %v352_v21 }
  0x27   : > { %667 = vmatpush.msra.mxu3 %v352_v21  ;;  %382 = vmatpush.msra.mxu1 %v351_v23 }
  0x28   : > { %633 = vmatmul.msk.f32.gmra.mxu0 %vm275_vm0, %v264_v5  ;;  %668 = vmatpush.msra.mxu2 %v351_v23 }
  0x29   : > { %669 = vmatpush.msra.mxu3 %v351_v23  ;;  %383 = vmatpush.msra.mxu1 %v350_v24 }
  0x2a   : > { %670 = vmatpush.msra.mxu2 %v350_v24 }
  0x2b   : > { %671 = vmatpush.msra.mxu3 %v350_v24  ;;  %384 = vmatpush.msra.mxu1 %v349_v25 }
  0x2c   : > { %672 = vmatpush.msra.mxu2 %v349_v25 }
  0x2d   : > { %673 = vmatpush.msra.mxu3 %v349_v25 }
  0x30   : > { %634 = vmatmul.msk.f32.gmra.mxu0 %vm275_vm0, %v265_v10 }
  0x38   : > { %635 = vmatmul.msk.f32.gmra.mxu0 %vm275_vm0, %v266_v15 }
  0x40   : > { %636 = vmatmul.msk.f32.gmra.mxu0 %vm275_vm0, %v267_v20 }
  0x48   : > { %637 = vmatmul.msk.f32.gmra.mxu0 %vm275_vm0, %v268_v22 }
  0x8d   : > { %v317_v27 = vpop.f32.mrf.mxu0 }
  0x8e   : > { %v318_v28 = vadd.f32 %v699_v26, %v317_v27 }
  0x90   : > { %v341_v29 = vmax.f32 %v318_v28, 0.0 }
  0x92   : > { %385 = vmatmul.f32.vlgmr.msra.gmra.mxu1 %v341_v29 }
  0x95   : > { %v320_v30 = vpop.f32.mrf.mxu0 }
  0x96   : > { %v321_v31 = vadd.f32 %v699_v26, %v320_v30 }
  0x98   : > { %v342_v32 = vmax.f32 %v321_v31, 0.0 }
  0x9a   : > { %388 = vmatmul.f32.gmra.mxu1 %v342_v32 }
  0x9d   : > { %v323_v33 = vpop.f32.mrf.mxu0 }
  0x9e   : > { %v324_v34 = vadd.f32 %v699_v26, %v323_v33 }
  0xa0   : > { %v343_v35 = vmax.f32 %v324_v34, 0.0 }
  0xa2   : > { %391 = vmatmul.f32.gmra.mxu1 %v343_v35 }
  0xa5   : > { %v326_v36 = vpop.f32.mrf.mxu0 }
  0xa6   : > { %v327_v37 = vadd.f32 %v699_v26, %v326_v36 }
  0xa8   : > { %v344_v38 = vmax.f32 %v327_v37, 0.0 }
  0xaa   : > { %394 = vmatmul.f32.vlgmr.msra.gmra.mxu2 %v344_v38 }
  0xad   : > { %v329_v39 = vpop.f32.mrf.mxu0 }
  0xae   : > { %v330_v40 = vadd.f32 %v699_v26, %v329_v39 }
  0xb0   : > { %v345_v41 = vmax.f32 %v330_v40, 0.0 }
  0xb2   : > { %397 = vmatmul.f32.vlgmr.msra.gmra.mxu3 %v345_v41 }
  0xb5   : > { %v332_v42 = vpop.f32.mrf.mxu0 }
  0xb6   : > { %v333_v43 = vadd.f32 %v699_v26, %v332_v42 }
  0xb8   : > { %v346_v44 = vmax.f32 %v333_v43, 0.0 }
  0xba   : > { %400 = vmatmul.f32.gmra.mxu3 %v346_v44 }
  0xbd   : > { %v335_v45 = vpop.f32.mrf.mxu0 }
  0xbe   : > { %v336_v46 = vadd.f32 %v699_v26, %v335_v45 }
  0xc0   : > { %v347_v47 = vmax.f32 %v336_v46, 0.0 }
  0xc2   : > { %403 = vmatmul.f32.gmra.mxu3 %v347_v47 }
  0xc5   : > { %v338_v48 = vpop.f32.mrf.mxu0 }
  0xc6   : > { %v339_v49 = vadd.f32 %v699_v26, %v338_v48 }
  0xc8   : > { %v348_v50 = vmax.f32 %v339_v49, 0.0 }
  0xca   : > { %406 = vmatmul.f32.gmra.mxu3 %v348_v50 }
 0x10f   : > { %v386_v51 = vpop.f32.mrf.mxu1 }
 0x110   : > { %v387_v59 = vadd.f32 %v700_v54, %v386_v51 }
 0x112   : > { %v410_v1 = vmax.f32 %v387_v59, 0.0 }
 0x114   : > { %v418_v8 = vrot.slane %v410_v1, 4 }
 0x116   : > { %v419_v15 = vmax.f32 %v410_v1, %v418_v8 }
 0x117   : > { %v389_v52 = vpop.f32.mrf.mxu1 }
 0x118   : > { %v390_v57 = vadd.f32 %v700_v54, %v389_v52  ;;  %v420_v23 = vrot.slane %v419_v15, 2 }
 0x11a   : > { %v411_v62 = vmax.f32 %v390_v57, 0.0  ;;  %v421_v32 = vmax.f32 %v419_v15, %v420_v23 }
 0x11c   : > { %v424_v5 = vrot.slane %v411_v62, 4  ;;  %v422_v42 = vrot.slane %v421_v32, 1 }
 0x11e   : > { %v425_v11 = vmax.f32 %v411_v62, %v424_v5  ;;  %v423_v51 = vmax.f32 %v421_v32, %v422_v42 }
 0x11f   : > { %v392_v55 = vpop.f32.mrf.mxu1 }
 0x120   : > { %v393_v58 = vadd.f32 %v700_v54, %v392_v55  ;;  %v426_v19 = vrot.slane %v425_v11, 2 }
 0x122   : > { %v412_v63 = vmax.f32 %v393_v58, 0.0  ;;  %v427_v27 = vmax.f32 %v425_v11, %v426_v19 }
 0x124   : > { %v430_v7 = vrot.slane %v412_v63, 4  ;;  %v428_v37 = vrot.slane %v427_v27, 1 }
 0x126   : > { %v431_v13 = vmax.f32 %v412_v63, %v430_v7  ;;  %v429_v46 = vmax.f32 %v427_v27, %v428_v37 }
 0x128   : > { %v432_v22 = vrot.slane %v431_v13, 2  ;;  %v475_v55 = vsel %vm474_vm1, %v429_v46, %v423_v51 }
 0x12a   : > { %v433_v30 = vmax.f32 %v431_v13, %v432_v22 }
 0x12c   : > { %v434_v40 = vrot.slane %v433_v30, 1 }
 0x12d   : > { %v395_v56 = vpop.f32.mrf.mxu2 }
 0x12e   : > { %v396_v60 = vadd.f32 %v700_v54, %v395_v56  ;;  %v435_v49 = vmax.f32 %v433_v30, %v434_v40 }
 0x130   : > { %v413_v2 = vmax.f32 %v396_v60, 0.0  ;;  %v477_v59 = vsel %vm476_vm2, %v435_v49, %v475_v55 }
 0x132   : > { %v436_v9 = vrot.slane %v413_v2, 4 }
 0x134   : > { %v437_v16 = vmax.f32 %v413_v2, %v436_v9 }
 0x135   : > { %v398_v53 = vpop.f32.mrf.mxu3 }
 0x136   : > { %v399_v61 = vadd.f32 %v700_v54, %v398_v53  ;;  %v438_v24 = vrot.slane %v437_v16, 2 }
 0x138   : > { %v414_v4 = vmax.f32 %v399_v61, 0.0  ;;  %v439_v33 = vmax.f32 %v437_v16, %v438_v24 }
 0x13a   : > { %v442_v10 = vrot.slane %v414_v4, 4  ;;  %v440_v43 = vrot.slane %v439_v33, 1 }
 0x13c   : > { %v443_v18 = vmax.f32 %v414_v4, %v442_v10  ;;  %v441_v52 = vmax.f32 %v439_v33, %v440_v43 }
 0x13d   : > { %v401_v0 = vpop.f32.mrf.mxu3 }
 0x13e   : > { %v402_v3 = vadd.f32 %v700_v54, %v401_v0  ;;  %v444_v26 = vrot.slane %v443_v18, 2  ;;  %v479_v61 = vsel %vm478_vm3, %v441_v52, %v477_v59 }
 0x140   : > { %v415_v6 = vmax.f32 %v402_v3, 0.0  ;;  %v445_v36 = vmax.f32 %v443_v18, %v444_v26 }
 0x142   : > { %v448_v12 = vrot.slane %v415_v6, 4  ;;  %v446_v45 = vrot.slane %v445_v36, 1 }
 0x144   : > { %v449_v20 = vmax.f32 %v415_v6, %v448_v12 }
 0x145   : > { %v404_v14 = vpop.f32.mrf.mxu3 }
 0x146   : > { %v405_v17 = vadd.f32 %v700_v54, %v404_v14  ;;  %v450_v28 = vrot.slane %v449_v20, 2 }
 0x148   : > { %v416_v21 = vmax.f32 %v405_v17, 0.0  ;;  %v451_v38 = vmax.f32 %v449_v20, %v450_v28 }
 0x14a   : > { %v454_v25 = vrot.slane %v416_v21, 4  ;;  %v452_v47 = vrot.slane %v451_v38, 1 }
 0x14c   : > { %v455_v29 = vmax.f32 %v416_v21, %v454_v25  ;;  %v453_v56 = vmax.f32 %v451_v38, %v452_v47 }
 0x14d   : > { %v407_v31 = vpop.f32.mrf.mxu3 }
 0x14e   : > { %v456_v34 = vrot.slane %v455_v29, 2  ;;  %v408_v35 = vadd.f32 %v700_v54, %v407_v31  ;;  %v447_v54 = vmax.f32 %v445_v36, %v446_v45 }
 0x150   : > { %v417_v39 = vmax.f32 %v408_v35, 0.0  ;;  %v457_v41 = vmax.f32 %v455_v29, %v456_v34  ;;  %v481_v62 = vsel %vm480_vm4, %v447_v54, %v479_v61 }
 0x151   : > { %v483_v0 = vsel %vm482_vm5, %v453_v56, %v481_v62 }
 0x152   : > { %v460_v44 = vrot.slane %v417_v39, 4  ;;  %v458_v50 = vrot.slane %v457_v41, 1 }
 0x154   : > { %v461_v48 = vmax.f32 %v417_v39, %v460_v44  ;;  %v459_v58 = vmax.f32 %v457_v41, %v458_v50 }
 0x156   : > { %v462_v53 = vrot.slane %v461_v48, 2  ;;  %v485_v1 = vsel %vm484_vm6, %v459_v58, %v483_v0 }
 0x158   : > { %v463_v57 = vmax.f32 %v461_v48, %v462_v53 }
 0x15a   : > { %v464_v60 = vrot.slane %v463_v57, 1 }
 0x15c   : > { %v465_v63 = vmax.f32 %v463_v57, %v464_v60 }
 0x15e   : > { %v487_v2 = vsel %vm486_vm7, %v465_v63, %v485_v1 }
 0x15f   : > { %489 = vxpose.xlu0.b32.start.end [1/1] (short) %v487_v2, 128 }
 0x203   : > { %v505_v3 = vpop.trf.xlu0 }
 0x204   : > { %522 = vst.msk [vmem:[%s861_s27] sm:$0xff] %vm521_vm8, %v505_v3 }
 0x20b   : > { %v506_v4 = vpop.trf.xlu0 }
 0x20c   : > { %523 = vst.msk [vmem:[%s861_s27 + $0x8] sm:$0xff] %vm521_vm8, %v506_v4 }
 0x213   : > { %v507_v5 = vpop.trf.xlu0 }
 0x214   : > { %524 = vst.msk [vmem:[%s861_s27 + $0x10] sm:$0xff] %vm521_vm8, %v507_v5 }
 0x21b   : > { %v508_v6 = vpop.trf.xlu0 }
 0x21c   : > { %525 = vst.msk [vmem:[%s861_s27 + $0x18] sm:$0xff] %vm521_vm8, %v508_v6 }
 0x223   : > { %v509_v7 = vpop.trf.xlu0 }
 0x224   : > { %526 = vst.msk [vmem:[%s861_s27 + $0x20] sm:$0xff] %vm521_vm8, %v509_v7 }
 0x22b   : > { %v510_v8 = vpop.trf.xlu0 }
 0x22c   : > { %527 = vst.msk [vmem:[%s861_s27 + $0x28] sm:$0xff] %vm521_vm8, %v510_v8 }
 0x233   : > { %v511_v9 = vpop.trf.xlu0 }
 0x234   : > { %528 = vst.msk [vmem:[%s861_s27 + $0x30] sm:$0xff] %vm521_vm8, %v511_v9 }
 0x23b   : > { %v512_v10 = vpop.trf.xlu0 }
 0x23c   : > { %529 = vst.msk [vmem:[%s861_s27 + $0x38] sm:$0xff] %vm521_vm8, %v512_v10 }
 0x243   : > { %v513_v11 = vpop.trf.xlu0 }
 0x244   : > { %530 = vst.msk [vmem:[%s861_s27 + $0x40] sm:$0xff] %vm521_vm8, %v513_v11 }
 0x24b   : > { %v514_v12 = vpop.trf.xlu0 }
 0x24c   : > { %531 = vst.msk [vmem:[%s861_s27 + $0x48] sm:$0xff] %vm521_vm8, %v514_v12 }
 0x253   : > { %v515_v13 = vpop.trf.xlu0 }
 0x254   : > { %532 = vst.msk [vmem:[%s861_s27 + $0x50] sm:$0xff] %vm521_vm8, %v515_v13 }
 0x25b   : > { %v516_v14 = vpop.trf.xlu0 }
 0x25c   : > { %533 = vst.msk [vmem:[%s861_s27 + $0x58] sm:$0xff] %vm521_vm8, %v516_v14 }
 0x263   : > { %v517_v15 = vpop.trf.xlu0 }
 0x264   : > { %534 = vst.msk [vmem:[%s861_s27 + $0x60] sm:$0xff] %vm521_vm8, %v517_v15 }
 0x26b   : > { %v518_v16 = vpop.trf.xlu0 }
 0x26c   : > { %535 = vst.msk [vmem:[%s861_s27 + $0x68] sm:$0xff] %vm521_vm8, %v518_v16 }
 0x273   : > { %v519_v17 = vpop.trf.xlu0 }
 0x274   : > { %536 = vst.msk [vmem:[%s861_s27 + $0x70] sm:$0xff] %vm521_vm8, %v519_v17 }
 0x27b   : > { %v520_v18 = vpop.trf.xlu0 }
 0x27c   : > { %537 = vst.msk [vmem:[%s861_s27 + $0x78] sm:$0xff] %vm521_vm8, %v520_v18 }
 0x27d PF: > { %s15_s20 = sadd.s32 1, %s723_s20   ;;  %s910_s18 = smov %s719_s19 }
 0x27e   : > { %p12_p5 = scmp.ge.s32.totalorder %s15_s20, 4   ;;  %s911_s19 = smov %s913_s21 }
 0x280   :  { %14 = sbr.rel (!%p12_p5) target bundleno = 2 (0x2), region = 70 }

</bundles_post_ra>
